<compile_context>
chip_gen: v7x
topology: tpu7x:2x2x1
jax: 0.10.0
libtpu: 0.0.40
codegen_flags: <defaults>
</compile_context>

<pallas_src>
import jax
import jax.numpy as jnp
from jax.experimental import pallas as pl
from jax.experimental.pallas import tpu as pltpu


def _round_up(x, m):
    return ((x + m - 1) // m) * m


def _normalize(x, eps=1e-6):
    # F.normalize(x, p=2, dim=-1, eps) semantics: x / max(||x||, eps)
    n = jnp.sqrt(jnp.sum(x * x, axis=-1, keepdims=True))
    return x / jnp.maximum(n, eps)


# --------------------- Kernel 1: per-vertex Phong lighting ---------------------
# Layout: vertices on lanes, attribute channels on sublanes.
#   geom_ref : (9, VT)  rows 0-2 verts xyz, 3-5 normals xyz, 6-8 vertex RGB
#   params_ref (SMEM, (32,) f32):
#     0-2 light_location, 3-5 light_ambient, 6-8 light_diffuse, 9-11 light_specular,
#     12-14 cam_center, 15-17 mat_ambient, 18-20 mat_diffuse, 21-23 mat_specular,
#     24 shininess.
def vertex_lighting_kernel(params_ref, geom_ref, out_ref):
    p = params_ref
    eps = jnp.float32(1e-6)

    vx, vy, vz = geom_ref[0:1, :], geom_ref[1:2, :], geom_ref[2:3, :]
    nx, ny, nz = geom_ref[3:4, :], geom_ref[4:5, :], geom_ref[5:6, :]
    cr, cg, cb = geom_ref[6:7, :], geom_ref[7:8, :], geom_ref[8:9, :]

    # normalize(normals)
    inv_n = 1.0 / jnp.maximum(jnp.sqrt(nx * nx + ny * ny + nz * nz), eps)
    nx, ny, nz = nx * inv_n, ny * inv_n, nz * inv_n

    # light direction = normalize(light_location - verts)
    dx, dy, dz = p[0] - vx, p[1] - vy, p[2] - vz
    inv_d = 1.0 / jnp.maximum(jnp.sqrt(dx * dx + dy * dy + dz * dz), eps)
    dx, dy, dz = dx * inv_d, dy * inv_d, dz * inv_d

    cos = nx * dx + ny * dy + nz * dz                 # (1, VT)
    cos_pos = jnp.maximum(cos, 0.0)

    # view direction = normalize(camera_center - verts)
    wx, wy, wz = p[12] - vx, p[13] - vy, p[14] - vz
    inv_w = 1.0 / jnp.maximum(jnp.sqrt(wx * wx + wy * wy + wz * wz), eps)
    wx, wy, wz = wx * inv_w, wy * inv_w, wz * inv_w

    # reflect = -direction + 2 * cos * normal
    rx = 2.0 * cos * nx - dx
    ry = 2.0 * cos * ny - dy
    rz = 2.0 * cos * nz - dz

    alpha = jnp.maximum(wx * rx + wy * ry + wz * rz, 0.0)
    alpha = jnp.where(cos > 0.0, alpha, 0.0)
    # alpha ** shininess with torch.pow semantics (0 ** s = 0 for s > 0),
    # written as exp/log so it lowers to the EUP.
    log_a = jnp.log(jnp.where(alpha > 0.0, alpha, 1.0))
    pow_a = jnp.where(alpha > 0.0, jnp.exp(p[24] * log_a), 0.0)

    # shaded_c = rgb_c * (mat_amb_c*light_amb_c + mat_dif_c*light_dif_c*max(cos,0))
    #            + mat_spec_c*light_spec_c*pow_a
    out_ref[0:1, :] = cr * (p[15] * p[3] + p[18] * p[6] * cos_pos) + p[21] * p[9] * pow_a
    out_ref[1:2, :] = cg * (p[16] * p[4] + p[19] * p[7] * cos_pos) + p[22] * p[10] * pow_a
    out_ref[2:3, :] = cb * (p[17] * p[5] + p[20] * p[8] * cos_pos) + p[23] * p[11] * pow_a


# -------- Kernel 2: face-color gather + barycentric interp + hard RGB blend ----
# Grid = (pixel_tiles, face_tiles); face axis innermost, reduction ("arbitrary").
# Layout: pixels on the lane axis; channels / faces on the sublane axis.
#   pix_ref : (4, TP)  row 0 = int32 pix_to_face (bit-cast into f32), rows 1-3 = bary.
#   tab_ref : (24, FT) rows 8*k + c = channel c of face vertex k (rows 3-7 zero pad).
#   out_ref : (4, TP)  planar RGBA accumulator, resident across the face axis.
def pixel_shade_kernel(pix_ref, tab_ref, out_ref):
    j = pl.program_id(1)
    ft = tab_ref.shape[1]
    tp = pix_ref.shape[1]

    @pl.when(j == 0)
    def _():
        out_ref[...] = jnp.zeros_like(out_ref)

    # j-independent one-hot: shift the per-pixel face id instead of the big iota.
    idx = pltpu.bitcast(pix_ref[0:1, :], jnp.int32) - j * ft        # (1, TP)
    f_ids = jax.lax.broadcasted_iota(jnp.int32, (ft, tp), 0)        # fixed 0..FT-1
    # Background (-1) / padded pixels never match, so they gather zero (matches
    # interpolate_face_attributes' masking).
    onehot = (f_ids == idx).astype(jnp.float32)                      # (FT, TP)

    # Fused gather of all 3 face-vertex colors in one MXU pass:
    # (24, FT) @ (FT, TP) -> (24, TP).
    cm = jnp.dot(tab_ref[...], onehot, preferred_element_type=jnp.float32)

    b0 = pix_ref[1:2, :]
    b1 = pix_ref[2:3, :]
    b2 = pix_ref[3:4, :]
    # Rows 0-2 = RGB; row 3 picks up only zero-padded table rows (stays 0).
    out_ref[...] += b0 * cm[0:4, :] + b1 * cm[8:12, :] + b2 * cm[16:20, :]

    @pl.when(j == pl.num_programs(1) - 1)
    def _():
        out_ref[3:4, :] = jnp.ones((1, tp), jnp.float32)             # alpha = 1


# --------------------------------- Wrapper -------------------------------------
def gourad_shader_forward(verts, normals, verts_rgb, faces, pix_to_face, bary_coords,
                          light_location, light_ambient, light_diffuse, light_specular,
                          cam_center, mat_ambient, mat_diffuse, mat_specular, shininess,
                          *, pixel_tile=2048, face_tile=1024, vertex_tile=2048):
    V = verts.shape[0]
    F = faces.shape[0]
    N, H, W, K = pix_to_face.shape

    # ---- stage 1: vertex lighting (vertices on lanes, tiled "parallel" grid) ----
    VT = min(vertex_tile, _round_up(V, 128))
    Vp = _round_up(V, VT)
    geom = jnp.concatenate(
        [verts.T, normals.T, verts_rgb.T], axis=0).astype(jnp.float32)   # (9, V)
    geom = jnp.pad(geom, ((0, 0), (0, Vp - V)))

    params = jnp.concatenate([
        jnp.asarray(light_location, jnp.float32).reshape(3),
        jnp.asarray(light_ambient, jnp.float32).reshape(3),
        jnp.asarray(light_diffuse, jnp.float32).reshape(3),
        jnp.asarray(light_specular, jnp.float32).reshape(3),
        jnp.asarray(cam_center, jnp.float32).reshape(3),
        jnp.asarray(mat_ambient, jnp.float32).reshape(3),
        jnp.asarray(mat_diffuse, jnp.float32).reshape(3),
        jnp.asarray(mat_specular, jnp.float32).reshape(3),
        jnp.asarray([shininess], jnp.float32),
        jnp.zeros((7,), jnp.float32),
    ])                                                                   # (32,)

    shaded_t = pl.pallas_call(
        vertex_lighting_kernel,
        out_shape=jax.ShapeDtypeStruct((3, Vp), jnp.float32),
        grid=(Vp // VT,),
        in_specs=[
            pl.BlockSpec(memory_space=pltpu.MemorySpace.SMEM),           # scalar params
            pl.BlockSpec((9, VT), lambda i: (0, i)),                     # packed geometry
        ],
        out_specs=pl.BlockSpec((3, VT), lambda i: (0, i)),
        compiler_params=pltpu.CompilerParams(
            dimension_semantics=("parallel",)),
    )(params, geom)
    shaded = shaded_t[:, :V].T                                           # (V, 3)

    # ---- glue: combined face-vertex color table, faces on lanes ----
    FT = min(face_tile, _round_up(F, 128))          # faces per tile (mult of 128)
    Fp = _round_up(F, FT)                           # single face tile when F <= face_tile
    face_colors = shaded[faces]                                          # (F, 3 vtx, 3 ch)
    # (3 vtx, 3 ch, F) -> pad channels 3->8 and faces F->Fp -> (24, Fp)
    tab = jnp.pad(jnp.transpose(face_colors, (1, 2, 0)),
                  ((0, 0), (0, 5), (0, Fp - F))).reshape(24, Fp)

    # ---- stage 2: K=0 only, pixels-on-lane, merged planar input ----
    idx_k0 = pix_to_face[..., 0].astype(jnp.int32)                       # (N, H, W)
    bary_k0 = bary_coords[..., 0, :].astype(jnp.float32)                 # (N, H, W, 3)
    P = N * H * W
    TP = min(pixel_tile, _round_up(P, 128))         # pixel tile (mult of 128)
    Pp = _round_up(P, TP)
    idx_row = jnp.pad(idx_k0.reshape(1, P), ((0, 0), (0, Pp - P)), constant_values=-1)
    idx_row = jax.lax.bitcast_convert_type(idx_row, jnp.float32)         # exact int32 bits
    bary_rows = jnp.pad(bary_k0.reshape(P, 3).T, ((0, 0), (0, Pp - P)))  # (3, Pp)
    pix = jnp.concatenate([idx_row, bary_rows], axis=0)                  # (4, Pp)

    out_planar = pl.pallas_call(
        pixel_shade_kernel,
        out_shape=jax.ShapeDtypeStruct((4, Pp), jnp.float32),
        grid=(Pp // TP, Fp // FT),
        in_specs=[
            pl.BlockSpec((4, TP), lambda i, j: (0, i)),      # idx (bit-cast) + bary
            pl.BlockSpec((24, FT), lambda i, j: (0, j)),     # combined color table
        ],
        out_specs=pl.BlockSpec((4, TP), lambda i, j: (0, i)),  # planar RGBA accumulator
        compiler_params=pltpu.CompilerParams(
            dimension_semantics=("parallel", "arbitrary"),
            vmem_limit_bytes=32 * 1024 * 1024),
    )(pix, tab)

    # Planar (4, Pp) -> (N, H, W, 4).
    return out_planar[:, :P].T.reshape(N, H, W, 4)


# ----------------------------- pure-JAX reference ------------------------------
def reference_forward(verts, normals, verts_rgb, faces, pix_to_face, bary_coords,
                      light_location, light_ambient, light_diffuse, light_specular,
                      cam_center, mat_ambient, mat_diffuse, mat_specular, shininess):
    nrm = _normalize(normals)
    direction = _normalize(light_location - verts)
    cos_angle = jnp.sum(nrm * direction, axis=-1, keepdims=True)
    l_dif = light_diffuse * jnp.maximum(cos_angle, 0.0)
    mask = (cos_angle > 0).astype(jnp.float32)
    view_dir = _normalize(cam_center - verts)
    reflect = -direction + 2.0 * cos_angle * nrm
    alpha = jnp.maximum(jnp.sum(view_dir * reflect, axis=-1, keepdims=True), 0.0) * mask
    l_spec = light_specular * jnp.power(alpha, shininess)
    shaded = verts_rgb * (mat_ambient * light_ambient + mat_diffuse * l_dif) + mat_specular * l_spec
    face_colors = shaded[faces]                                   # (F, 3, 3)
    safe = jnp.where(pix_to_face < 0, 0, pix_to_face)
    pfv = face_colors[safe]                                       # (N,H,W,K,3,3)
    pv = jnp.sum(bary_coords[..., None] * pfv, axis=-2)           # (N,H,W,K,3)
    pv = jnp.where((pix_to_face < 0)[..., None], 0.0, pv)
    rgb = pv[..., 0, :]
    N, H, W, _ = pix_to_face.shape
    return jnp.concatenate([rgb, jnp.ones((N, H, W, 1), jnp.float32)], axis=-1)


if __name__ == "__main__":
    key = jax.random.PRNGKey(0)
    N, H, W, K = 2, 16, 16, 1
    V, F = 24, 12
    ks = jax.random.split(key, 6)
    verts = jax.random.normal(ks[0], (V, 3), jnp.float32)
    normals = jax.random.normal(ks[1], (V, 3), jnp.float32)
    verts_rgb = jax.random.uniform(ks[2], (V, 3), jnp.float32)
    faces = jax.random.randint(ks[3], (F, 3), 0, V, jnp.int32)
    pix_to_face = jax.random.randint(ks[4], (N, H, W, K), -1, F, jnp.int32)
    bary_raw = jax.random.uniform(ks[5], (N, H, W, K, 3), jnp.float32, 1e-3, 1.0)
    bary_coords = bary_raw / jnp.sum(bary_raw, axis=-1, keepdims=True)

    # Deterministic light / material / camera parameters (PyTorch3D defaults).
    # TODO(synk): PointLights/Materials/Cameras batch-to-packed-vertex mapping is
    # assumed to be a single broadcast parameter set (batch size 1).
    light_location = jnp.array([0.0, 1.0, 0.0], jnp.float32)
    light_ambient = jnp.array([0.5, 0.5, 0.5], jnp.float32)
    light_diffuse = jnp.array([0.3, 0.3, 0.3], jnp.float32)
    light_specular = jnp.array([0.2, 0.2, 0.2], jnp.float32)
    cam_center = jnp.array([0.0, 0.0, 2.7], jnp.float32)
    mat_ambient = jnp.array([1.0, 1.0, 1.0], jnp.float32)
    mat_diffuse = jnp.array([1.0, 1.0, 1.0], jnp.float32)
    mat_specular = jnp.array([1.0, 1.0, 1.0], jnp.float32)
    shininess = 64.0

    args = (verts, normals, verts_rgb, faces, pix_to_face, bary_coords,
            light_location, light_ambient, light_diffuse, light_specular,
            cam_center, mat_ambient, mat_diffuse, mat_specular, shininess)

    images = gourad_shader_forward(*args)
    images = jax.block_until_ready(images)

    ref = reference_forward(*args)
    assert images.shape == (N, H, W, 4), images.shape
    assert jnp.allclose(images, ref, atol=1e-3, rtol=1e-3)
    print("KERNEL_OK")
</pallas_src>

<mosaic_0001>
module attributes {stable_mosaic.version = 11 : i64} {
  func.func @vertex_lighting_kernel(%arg0: i32, %arg1: memref<32xf32, #tpu.memory_space<smem>>, %arg2: memref<9x128xf32, #tpu.memory_space<vmem>>, %arg3: memref<3x128xf32, #tpu.memory_space<vmem>>) attributes {dimension_semantics = [#tpu.dimension_semantics<parallel>], iteration_bounds = array<i64: 1>, scalar_prefetch = 0 : i64, scratch_operands = 0 : i64, tpu.core_type = #tpu.core_type<tc>, window_params = [{transform_indices = @transform_0, window_bounds = array<i64: 32>}, {transform_indices = @transform_1, window_bounds = array<i64: 9, 128>}, {transform_indices = @transform_2, window_bounds = array<i64: 3, 128>}]} {
    %c0 = arith.constant 0 : index
    %c0_0 = arith.constant 0 : index
    %0 = vector.load %arg2[%c0, %c0_0] : memref<9x128xf32, #tpu.memory_space<vmem>>, vector<1x128xf32>
    %c1 = arith.constant 1 : index
    %c0_1 = arith.constant 0 : index
    %1 = vector.load %arg2[%c1, %c0_1] : memref<9x128xf32, #tpu.memory_space<vmem>>, vector<1x128xf32>
    %c2 = arith.constant 2 : index
    %c0_2 = arith.constant 0 : index
    %2 = vector.load %arg2[%c2, %c0_2] : memref<9x128xf32, #tpu.memory_space<vmem>>, vector<1x128xf32>
    %c3 = arith.constant 3 : index
    %c0_3 = arith.constant 0 : index
    %3 = vector.load %arg2[%c3, %c0_3] : memref<9x128xf32, #tpu.memory_space<vmem>>, vector<1x128xf32>
    %c4 = arith.constant 4 : index
    %c0_4 = arith.constant 0 : index
    %4 = vector.load %arg2[%c4, %c0_4] : memref<9x128xf32, #tpu.memory_space<vmem>>, vector<1x128xf32>
    %c5 = arith.constant 5 : index
    %c0_5 = arith.constant 0 : index
    %5 = vector.load %arg2[%c5, %c0_5] : memref<9x128xf32, #tpu.memory_space<vmem>>, vector<1x128xf32>
    %c6 = arith.constant 6 : index
    %c0_6 = arith.constant 0 : index
    %6 = vector.load %arg2[%c6, %c0_6] : memref<9x128xf32, #tpu.memory_space<vmem>>, vector<1x128xf32>
    %c7 = arith.constant 7 : index
    %c0_7 = arith.constant 0 : index
    %7 = vector.load %arg2[%c7, %c0_7] : memref<9x128xf32, #tpu.memory_space<vmem>>, vector<1x128xf32>
    %c8 = arith.constant 8 : index
    %c0_8 = arith.constant 0 : index
    %8 = vector.load %arg2[%c8, %c0_8] : memref<9x128xf32, #tpu.memory_space<vmem>>, vector<1x128xf32>
    %9 = arith.mulf %3, %3 : vector<1x128xf32>
    %10 = arith.mulf %4, %4 : vector<1x128xf32>
    %11 = arith.addf %9, %10 : vector<1x128xf32>
    %12 = arith.mulf %5, %5 : vector<1x128xf32>
    %13 = arith.addf %11, %12 : vector<1x128xf32>
    %14 = math.sqrt %13 : vector<1x128xf32>
    %cst = arith.constant 9.99999997E-7 : f32
    %15 = vector.broadcast %cst : f32 to vector<1x128xf32>
    %16 = arith.maximumf %14, %15 : vector<1x128xf32>
    %cst_9 = arith.constant 1.000000e+00 : f32
    %17 = vector.broadcast %cst_9 : f32 to vector<1x128xf32>
    %18 = arith.divf %17, %16 : vector<1x128xf32>
    %19 = arith.mulf %3, %18 : vector<1x128xf32>
    %20 = arith.mulf %4, %18 : vector<1x128xf32>
    %21 = arith.mulf %5, %18 : vector<1x128xf32>
    %c0_10 = arith.constant 0 : index
    %22 = memref.load %arg1[%c0_10] : memref<32xf32, #tpu.memory_space<smem>>
    %23 = vector.broadcast %22 : f32 to vector<1x128xf32>
    %24 = arith.subf %23, %0 : vector<1x128xf32>
    %c1_11 = arith.constant 1 : index
    %25 = memref.load %arg1[%c1_11] : memref<32xf32, #tpu.memory_space<smem>>
    %26 = vector.broadcast %25 : f32 to vector<1x128xf32>
    %27 = arith.subf %26, %1 : vector<1x128xf32>
    %c2_12 = arith.constant 2 : index
    %28 = memref.load %arg1[%c2_12] : memref<32xf32, #tpu.memory_space<smem>>
    %29 = vector.broadcast %28 : f32 to vector<1x128xf32>
    %30 = arith.subf %29, %2 : vector<1x128xf32>
    %31 = arith.mulf %24, %24 : vector<1x128xf32>
    %32 = arith.mulf %27, %27 : vector<1x128xf32>
    %33 = arith.addf %31, %32 : vector<1x128xf32>
    %34 = arith.mulf %30, %30 : vector<1x128xf32>
    %35 = arith.addf %33, %34 : vector<1x128xf32>
    %36 = math.sqrt %35 : vector<1x128xf32>
    %cst_13 = arith.constant 9.99999997E-7 : f32
    %37 = vector.broadcast %cst_13 : f32 to vector<1x128xf32>
    %38 = arith.maximumf %36, %37 : vector<1x128xf32>
    %cst_14 = arith.constant 1.000000e+00 : f32
    %39 = vector.broadcast %cst_14 : f32 to vector<1x128xf32>
    %40 = arith.divf %39, %38 : vector<1x128xf32>
    %41 = arith.mulf %24, %40 : vector<1x128xf32>
    %42 = arith.mulf %27, %40 : vector<1x128xf32>
    %43 = arith.mulf %30, %40 : vector<1x128xf32>
    %44 = arith.mulf %19, %41 : vector<1x128xf32>
    %45 = arith.mulf %20, %42 : vector<1x128xf32>
    %46 = arith.addf %44, %45 : vector<1x128xf32>
    %47 = arith.mulf %21, %43 : vector<1x128xf32>
    %48 = arith.addf %46, %47 : vector<1x128xf32>
    %cst_15 = arith.constant 0.000000e+00 : f32
    %49 = vector.broadcast %cst_15 : f32 to vector<1x128xf32>
    %50 = arith.maximumf %48, %49 : vector<1x128xf32>
    %c12 = arith.constant 12 : index
    %51 = memref.load %arg1[%c12] : memref<32xf32, #tpu.memory_space<smem>>
    %52 = vector.broadcast %51 : f32 to vector<1x128xf32>
    %53 = arith.subf %52, %0 : vector<1x128xf32>
    %c13 = arith.constant 13 : index
    %54 = memref.load %arg1[%c13] : memref<32xf32, #tpu.memory_space<smem>>
    %55 = vector.broadcast %54 : f32 to vector<1x128xf32>
    %56 = arith.subf %55, %1 : vector<1x128xf32>
    %c14 = arith.constant 14 : index
    %57 = memref.load %arg1[%c14] : memref<32xf32, #tpu.memory_space<smem>>
    %58 = vector.broadcast %57 : f32 to vector<1x128xf32>
    %59 = arith.subf %58, %2 : vector<1x128xf32>
    %60 = arith.mulf %53, %53 : vector<1x128xf32>
    %61 = arith.mulf %56, %56 : vector<1x128xf32>
    %62 = arith.addf %60, %61 : vector<1x128xf32>
    %63 = arith.mulf %59, %59 : vector<1x128xf32>
    %64 = arith.addf %62, %63 : vector<1x128xf32>
    %65 = math.sqrt %64 : vector<1x128xf32>
    %cst_16 = arith.constant 9.99999997E-7 : f32
    %66 = vector.broadcast %cst_16 : f32 to vector<1x128xf32>
    %67 = arith.maximumf %65, %66 : vector<1x128xf32>
    %cst_17 = arith.constant 1.000000e+00 : f32
    %68 = vector.broadcast %cst_17 : f32 to vector<1x128xf32>
    %69 = arith.divf %68, %67 : vector<1x128xf32>
    %70 = arith.mulf %53, %69 : vector<1x128xf32>
    %71 = arith.mulf %56, %69 : vector<1x128xf32>
    %72 = arith.mulf %59, %69 : vector<1x128xf32>
    %cst_18 = arith.constant 2.000000e+00 : f32
    %73 = vector.broadcast %cst_18 : f32 to vector<1x128xf32>
    %74 = arith.mulf %73, %48 : vector<1x128xf32>
    %75 = arith.mulf %74, %19 : vector<1x128xf32>
    %76 = arith.subf %75, %41 : vector<1x128xf32>
    %cst_19 = arith.constant 2.000000e+00 : f32
    %77 = vector.broadcast %cst_19 : f32 to vector<1x128xf32>
    %78 = arith.mulf %77, %48 : vector<1x128xf32>
    %79 = arith.mulf %78, %20 : vector<1x128xf32>
    %80 = arith.subf %79, %42 : vector<1x128xf32>
    %cst_20 = arith.constant 2.000000e+00 : f32
    %81 = vector.broadcast %cst_20 : f32 to vector<1x128xf32>
    %82 = arith.mulf %81, %48 : vector<1x128xf32>
    %83 = arith.mulf %82, %21 : vector<1x128xf32>
    %84 = arith.subf %83, %43 : vector<1x128xf32>
    %85 = arith.mulf %70, %76 : vector<1x128xf32>
    %86 = arith.mulf %71, %80 : vector<1x128xf32>
    %87 = arith.addf %85, %86 : vector<1x128xf32>
    %88 = arith.mulf %72, %84 : vector<1x128xf32>
    %89 = arith.addf %87, %88 : vector<1x128xf32>
    %cst_21 = arith.constant 0.000000e+00 : f32
    %90 = vector.broadcast %cst_21 : f32 to vector<1x128xf32>
    %91 = arith.maximumf %89, %90 : vector<1x128xf32>
    %cst_22 = arith.constant 0.000000e+00 : f32
    %92 = vector.broadcast %cst_22 : f32 to vector<1x128xf32>
    %93 = arith.cmpf ogt, %48, %92 : vector<1x128xf32>
    %cst_23 = arith.constant 0.000000e+00 : f32
    %94 = vector.broadcast %cst_23 : f32 to vector<1x128xf32>
    %95 = arith.select %93, %91, %94 : vector<1x128xi1>, vector<1x128xf32>
    %cst_24 = arith.constant 0.000000e+00 : f32
    %96 = vector.broadcast %cst_24 : f32 to vector<1x128xf32>
    %97 = arith.cmpf ogt, %95, %96 : vector<1x128xf32>
    %cst_25 = arith.constant 1.000000e+00 : f32
    %98 = vector.broadcast %cst_25 : f32 to vector<1x128xf32>
    %99 = arith.select %97, %95, %98 : vector<1x128xi1>, vector<1x128xf32>
    %100 = math.log %99 : vector<1x128xf32>
    %cst_26 = arith.constant 0.000000e+00 : f32
    %101 = vector.broadcast %cst_26 : f32 to vector<1x128xf32>
    %102 = arith.cmpf ogt, %95, %101 : vector<1x128xf32>
    %c24 = arith.constant 24 : index
    %103 = memref.load %arg1[%c24] : memref<32xf32, #tpu.memory_space<smem>>
    %104 = vector.broadcast %103 : f32 to vector<1x128xf32>
    %105 = arith.mulf %104, %100 : vector<1x128xf32>
    %106 = math.exp %105 : vector<1x128xf32>
    %cst_27 = arith.constant 0.000000e+00 : f32
    %107 = vector.broadcast %cst_27 : f32 to vector<1x128xf32>
    %108 = arith.select %102, %106, %107 : vector<1x128xi1>, vector<1x128xf32>
    %c15 = arith.constant 15 : index
    %109 = memref.load %arg1[%c15] : memref<32xf32, #tpu.memory_space<smem>>
    %c3_28 = arith.constant 3 : index
    %110 = memref.load %arg1[%c3_28] : memref<32xf32, #tpu.memory_space<smem>>
    %111 = arith.mulf %109, %110 : f32
    %c18 = arith.constant 18 : index
    %112 = memref.load %arg1[%c18] : memref<32xf32, #tpu.memory_space<smem>>
    %c6_29 = arith.constant 6 : index
    %113 = memref.load %arg1[%c6_29] : memref<32xf32, #tpu.memory_space<smem>>
    %114 = arith.mulf %112, %113 : f32
    %115 = vector.broadcast %114 : f32 to vector<1x128xf32>
    %116 = arith.mulf %115, %50 : vector<1x128xf32>
    %117 = vector.broadcast %111 : f32 to vector<1x128xf32>
    %118 = arith.addf %117, %116 : vector<1x128xf32>
    %119 = arith.mulf %6, %118 : vector<1x128xf32>
    %c21 = arith.constant 21 : index
    %120 = memref.load %arg1[%c21] : memref<32xf32, #tpu.memory_space<smem>>
    %c9 = arith.constant 9 : index
    %121 = memref.load %arg1[%c9] : memref<32xf32, #tpu.memory_space<smem>>
    %122 = arith.mulf %120, %121 : f32
    %123 = vector.broadcast %122 : f32 to vector<1x128xf32>
    %124 = arith.mulf %123, %108 : vector<1x128xf32>
    %125 = arith.addf %119, %124 : vector<1x128xf32>
    %c0_30 = arith.constant 0 : index
    %c0_31 = arith.constant 0 : index
    %126 = vector.load %arg3[%c0_30, %c0_31] : memref<3x128xf32, #tpu.memory_space<vmem>>, vector<1x128xf32>
    tpu.vector_store %arg3[%c0_30, %c0_31], %125 {strides = array<i32>} : memref<3x128xf32, #tpu.memory_space<vmem>>, vector<1x128xf32>,
    %c16 = arith.constant 16 : index
    %127 = memref.load %arg1[%c16] : memref<32xf32, #tpu.memory_space<smem>>
    %c4_32 = arith.constant 4 : index
    %128 = memref.load %arg1[%c4_32] : memref<32xf32, #tpu.memory_space<smem>>
    %129 = arith.mulf %127, %128 : f32
    %c19 = arith.constant 19 : index
    %130 = memref.load %arg1[%c19] : memref<32xf32, #tpu.memory_space<smem>>
    %c7_33 = arith.constant 7 : index
    %131 = memref.load %arg1[%c7_33] : memref<32xf32, #tpu.memory_space<smem>>
    %132 = arith.mulf %130, %131 : f32
    %133 = vector.broadcast %132 : f32 to vector<1x128xf32>
    %134 = arith.mulf %133, %50 : vector<1x128xf32>
    %135 = vector.broadcast %129 : f32 to vector<1x128xf32>
    %136 = arith.addf %135, %134 : vector<1x128xf32>
    %137 = arith.mulf %7, %136 : vector<1x128xf32>
    %c22 = arith.constant 22 : index
    %138 = memref.load %arg1[%c22] : memref<32xf32, #tpu.memory_space<smem>>
    %c10 = arith.constant 10 : index
    %139 = memref.load %arg1[%c10] : memref<32xf32, #tpu.memory_space<smem>>
    %140 = arith.mulf %138, %139 : f32
    %141 = vector.broadcast %140 : f32 to vector<1x128xf32>
    %142 = arith.mulf %141, %108 : vector<1x128xf32>
    %143 = arith.addf %137, %142 : vector<1x128xf32>
    %c1_34 = arith.constant 1 : index
    %c0_35 = arith.constant 0 : index
    %144 = vector.load %arg3[%c1_34, %c0_35] : memref<3x128xf32, #tpu.memory_space<vmem>>, vector<1x128xf32>
    tpu.vector_store %arg3[%c1_34, %c0_35], %143 {strides = array<i32>} : memref<3x128xf32, #tpu.memory_space<vmem>>, vector<1x128xf32>,
    %c17 = arith.constant 17 : index
    %145 = memref.load %arg1[%c17] : memref<32xf32, #tpu.memory_space<smem>>
    %c5_36 = arith.constant 5 : index
    %146 = memref.load %arg1[%c5_36] : memref<32xf32, #tpu.memory_space<smem>>
    %147 = arith.mulf %145, %146 : f32
    %c20 = arith.constant 20 : index
    %148 = memref.load %arg1[%c20] : memref<32xf32, #tpu.memory_space<smem>>
    %c8_37 = arith.constant 8 : index
    %149 = memref.load %arg1[%c8_37] : memref<32xf32, #tpu.memory_space<smem>>
    %150 = arith.mulf %148, %149 : f32
    %151 = vector.broadcast %150 : f32 to vector<1x128xf32>
    %152 = arith.mulf %151, %50 : vector<1x128xf32>
    %153 = vector.broadcast %147 : f32 to vector<1x128xf32>
    %154 = arith.addf %153, %152 : vector<1x128xf32>
    %155 = arith.mulf %8, %154 : vector<1x128xf32>
    %c23 = arith.constant 23 : index
    %156 = memref.load %arg1[%c23] : memref<32xf32, #tpu.memory_space<smem>>
    %c11 = arith.constant 11 : index
    %157 = memref.load %arg1[%c11] : memref<32xf32, #tpu.memory_space<smem>>
    %158 = arith.mulf %156, %157 : f32
    %159 = vector.broadcast %158 : f32 to vector<1x128xf32>
    %160 = arith.mulf %159, %108 : vector<1x128xf32>
    %161 = arith.addf %155, %160 : vector<1x128xf32>
    %c2_38 = arith.constant 2 : index
    %c0_39 = arith.constant 0 : index
    %162 = vector.load %arg3[%c2_38, %c0_39] : memref<3x128xf32, #tpu.memory_space<vmem>>, vector<1x128xf32>
    tpu.vector_store %arg3[%c2_38, %c0_39], %161 {strides = array<i32>} : memref<3x128xf32, #tpu.memory_space<vmem>>, vector<1x128xf32>,
    return
  }
  func.func @transform_0(%arg0: i32) -> i32 {
    %c0_i32 = arith.constant 0 : i32
    %c0_i32_0 = arith.constant 0 : i32
    return %c0_i32 : i32
  }
  func.func @transform_1(%arg0: i32) -> (i32, i32) {
    %c0_i32 = arith.constant 0 : i32
    %c0_i32_0 = arith.constant 0 : i32
    return %c0_i32, %arg0 : i32, i32
  }
  func.func @transform_2(%arg0: i32) -> (i32, i32) {
    %c0_i32 = arith.constant 0 : i32
    %c0_i32_0 = arith.constant 0 : i32
    return %c0_i32, %arg0 : i32, i32
  }
}

</mosaic_0001>

<bundles_post_ra>
// kernel: tpu_custom_call.1
= control target key start
LH: loop header
LB: loop body
LE: loop exit
PB: predicated region body
PF: predicated region fallthrough
CT: control target
= control target key end

     0   :  { %7 = vsyncpa [#allocation5], 0  ;;  %s427_s0 = inlined_call_operand.hbm [shape: f32[32], index: 0, kind: input, shape index: {}]   ;;  %s428_s1 = inlined_call_operand.hbm [shape: f32[9,128], index: 1, kind: input, shape index: {}]   ;;  %s429_s2 = inlined_call_operand.hbm [shape: f32[3,128], index: 2, kind: output, shape index: {}]  }
   0x1   :  { %8 = vsyncpa [#allocation3], 0 }
   0x2   :  { %9 = vsyncpa [#allocation4], 0  ;;  %s264_s11 = scalar_lea.hbm %s427_s0, 16 }
   0x3   :  { %p265_p0 = scmp.ne.s32.totalorder %s427_s0, %s264_s11  ;;  %p268_p1 = scmp.lt.u32.totalorder %s264_s11, %s427_s0 }
   0x5   :  { %p270_p2 = pnand %p268_p1, %p265_p0 }
   0x7   :  { %273 = shalt.err (!%p270_p2)
}
   0x8   :  { %s324_s16 = smov [#allocation2]   ;;  %s325_s19 = smov [#allocation6]  }
   0x9   :  { %17 = dma.hbm_to_smem %s427_s0, 16, %s324_s16, [#allocation5]  }
   0xa   :  { %s23_s20 = sshll.u32 %s325_s19, 4  ;;  %s274_s23 = scalar_lea.hbm %s428_s1, 256  ;;  %s24_s20 = int_to_ptr.vmem [resolvable:$true] %s23_s20 }
   0xb   :  { %p275_p3 = scmp.ne.s32.totalorder %s428_s1, %s274_s23  ;;  %p278_p4 = scmp.lt.u32.totalorder %s274_s23, %s428_s1 }
   0xd   :  { %p280_p5 = pnand %p278_p4, %p275_p3 }
   0xf   :  { %283 = shalt.err (!%p280_p5)
}
  0x10   :  { %s284_s28 = scalar_lea.vmem %s24_s20, 256  ;;  %p289_p7 = scmp.lt.s32.totalorder %s24_s20, %s24_s20 }
  0x11   :  { %p285_p6 = scmp.ne.s32.totalorder %s24_s20, %s284_s28  ;;  %p290_p8 = scmp.lt.s32.totalorder %s284_s28, %s284_s28 }
  0x13   :  { %p291_p9 = por %p290_p8, %p289_p7 }
  0x15   :  { %p292_p10 = pnand %p291_p9, %p285_p6 }
  0x17   :  { %295 = shalt.err (!%p292_p10)
}
  0x18   :  { %s326_s0 = smov 128   ;;  %s327_s29 = smov 8  }
  0x19   :  { %29 = dma.hbm_to_vmem [thread:$0]  %s428_s1, 256, %s24_s20, [#allocation3], %s326_s0, %s326_s0, %s327_s29  }
  0x1a   :  { %318 = dma.done.wait [#allocation5], 16  }
  0x1b   :  { %319 = vsyncadd [#allocation5], 4294967280 }
  0x1c   :  { %320 = dma.done.wait [#allocation3], 256  }
  0x1d   :  { %321 = vsyncadd [#allocation3], 4294967040 }
  0x1e   :  { %36 = sfence }
  0x1f   :  { %v368_v0 = vld [vmem:[#allocation6 + $0x3] sm:$0x1]  ;;  %v370_v1 = vld [vmem:[#allocation6 + $0x4] sm:$0x1]  ;;  %v372_v2 = vld [vmem:[#allocation6 + $0x5] sm:$0x1] }
  0x20   :  { %v46_v3 = vmul.f32 %v368_v0, %v368_v0  ;;  %v47_v4 = vmul.f32 %v370_v1, %v370_v1  ;;  %v49_v5 = vmul.f32 %v372_v2, %v372_v2  ;;  %s64_s1 = sld [smem:[#allocation2]]  ;;  %s219_s4 = sld [smem:[#allocation2 + $0x1]]  ;;  %v37_v8 = vld [vmem:[#allocation6] sm:$0x1]  ;;  %v38_v9 = vld [vmem:[#allocation6 + $0x1] sm:$0x1] }
  0x21   :  { %s220_s5 = sld [smem:[#allocation2 + $0x2]]  ;;  %s221_s6 = sld [smem:[#allocation2 + $0xc]]  ;;  %v39_v10 = vld [vmem:[#allocation6 + $0x2] sm:$0x1] }
  0x22   :  { %v48_v6 = vadd.f32 %v47_v4, %v46_v3  ;;  %s222_s7 = sld [smem:[#allocation2 + $0xd]]  ;;  %s223_s8 = sld [smem:[#allocation2 + $0xe]] }
  0x23   :  { %s224_s9 = sld [smem:[#allocation2 + $0x18]]  ;;  %s384_s10 = sld [smem:[#allocation2 + $0x12]] }
  0x24   :  { %v50_v7 = vadd.f32 %v49_v5, %v48_v6  ;;  %s228_s11 = sld [smem:[#allocation2 + $0x6]]  ;;  %s233_s12 = sld [smem:[#allocation2 + $0x13]] }
  0x25   :  { %s234_s13 = sld [smem:[#allocation2 + $0x7]]  ;;  %s239_s14 = sld [smem:[#allocation2 + $0x14]] }
  0x26   :  { %248 = vrsqrt.f32 %v50_v7  ;;  %v65_v11 = vstv %s64_s1  ;;  %v68_v12 = vstv %s219_s4  ;;  %vm53_vm0 = vcmp.eq.f32.partialorder %v50_v7, inf  ;;  %s240_s15 = sld [smem:[#allocation2 + $0x8]]  ;;  %s386_s16 = sld [smem:[#allocation2 + $0xf]] }
  0x27   :  { %v71_v13 = vstv %s220_s5  ;;  %v98_v14 = vstv %s221_s6  ;;  %v66_v15 = vsub.f32 %v65_v11, %v37_v8  ;;  %v69_v16 = vsub.f32 %v68_v12, %v38_v9  ;;  %s388_s17 = sld [smem:[#allocation2 + $0x3]]  ;;  %s390_s18 = sld [smem:[#allocation2 + $0x10]] }
  0x28   :  { %v72_v17 = vsub.f32 %v71_v13, %v39_v10  ;;  %v99_v18 = vsub.f32 %v98_v14, %v37_v8  ;;  %v101_v19 = vstv %s222_s7  ;;  %v104_v20 = vstv %s223_s8  ;;  %s392_s19 = sld [smem:[#allocation2 + $0x4]]  ;;  %s394_s20 = sld [smem:[#allocation2 + $0x11]] }
  0x29   :  { %v73_v21 = vmul.f32 %v66_v15, %v66_v15  ;;  %v74_v22 = vmul.f32 %v69_v16, %v69_v16  ;;  %v102_v24 = vsub.f32 %v101_v19, %v38_v9  ;;  %v105_v25 = vsub.f32 %v104_v20, %v39_v10  ;;  %s396_s21 = sld [smem:[#allocation2 + $0x5]]  ;;  %s401_s24 = sld [smem:[#allocation2 + $0x9]] }
  0x2a   :  { %v76_v23 = vmul.f32 %v72_v17, %v72_v17  ;;  %v106_v26 = vmul.f32 %v99_v18, %v99_v18  ;;  %v56_v35 = vand.u32 2147483648, %v50_v7  ;;  %vm55_vm1 = vcmp.eq.f32.partialorder %v50_v7, 0.0  ;;  %s154_s22 = smul.f32 %s228_s11, %s384_s10  ;;  %s399_s23 = sld [smem:[#allocation2 + $0x15]] }
  0x2b   :  { %v75_v27 = vadd.f32 %v74_v22, %v73_v21  ;;  %v107_v28 = vmul.f32 %v102_v24, %v102_v24  ;;  %v109_v29 = vmul.f32 %v105_v25, %v105_v25  ;;  %v144_v20 = vstv %s224_s9  ;;  %s172_s25 = smul.f32 %s234_s13, %s233_s12  ;;  %s403_s26 = sld [smem:[#allocation2 + $0x16]] }
  0x2c   :  { %s190_s27 = smul.f32 %s240_s15, %s239_s14  ;;  %s236_s0 = sld [smem:[#allocation2 + $0xa]] }
  0x2d   :  { %v77_v30 = vadd.f32 %v76_v23, %v75_v27  ;;  %v108_v31 = vadd.f32 %v107_v28, %v106_v26  ;;  %s151_s28 = smul.f32 %s388_s17, %s386_s16  ;;  %s241_s29 = sld [smem:[#allocation2 + $0x17]]  ;;  %v173_v26 = vstv %s172_s25 }
  0x2e   :  { %s242_s30 = sld [smem:[#allocation2 + $0xb]]  ;;  %s169_s3 = smul.f32 %s392_s19, %s390_s18  ;;  %v191_v27 = vstv %s190_s27 }
  0x2f   :  { %250 = vrsqrt.f32 %v77_v30  ;;  %v110_v34 = vadd.f32 %v109_v29, %v108_v31  ;;  %vm80_vm2 = vcmp.eq.f32.partialorder %v77_v30, inf  ;;  %v83_v40 = vand.u32 2147483648, %v77_v30  ;;  %s187_s1 = smul.f32 %s396_s21, %s394_s20  ;;  %s328_s7 = smov [#allocation7]  }
  0x30   :  { %v249_v32 = vpop.eup %248  ;;  %vm82_vm3 = vcmp.eq.f32.partialorder %v77_v30, 0.0  ;;  %v157_v31 = vstv %s151_s28  ;;  %s162_s4 = smul.f32 %s401_s24, %s399_s23  ;;  %s209_s8 = sshll.u32 %s328_s7, 4  ;;  %s210_s8 = int_to_ptr.vmem [resolvable:$true] %s209_s8 }
  0x31   :  { %v52_v33 = vmul.f32 %v249_v32, %v50_v7  ;;  %252 = vrsqrt.f32 %v110_v34  ;;  %vm113_vm4 = vcmp.eq.f32.partialorder %v110_v34, inf  ;;  %v116_v44 = vand.u32 2147483648, %v110_v34  ;;  %s296_s9 = scalar_lea.vmem %s210_s8, 64  ;;  %p301_p12 = scmp.lt.s32.totalorder %s210_s8, %s210_s8 }
  0x32   :  { %vm115_vm5 = vcmp.eq.f32.partialorder %v110_v34, 0.0  ;;  %v175_v32 = vstv %s169_s3  ;;  %s180_s5 = smul.f32 %s236_s0, %s403_s26  ;;  %p297_p11 = scmp.ne.s32.totalorder %s210_s8, %s296_s9 }
  0x33   :  { %v54_v36 = vsel %vm53_vm0, %v50_v7, %v52_v33  ;;  %v193_v33 = vstv %s187_s1  ;;  %p302_p13 = scmp.lt.s32.totalorder %s296_s9, %s296_s9 }
  0x34   :  { %v57_v37 = vsel %vm55_vm1, %v56_v35, %v54_v36  ;;  %s198_s6 = smul.f32 %s242_s30, %s241_s29 }
  0x35   :  { %v58_v38 = vmax.f32 %v57_v37, 1e-06  ;;  %v43_v37 = vld [vmem:[#allocation6 + $0x6] sm:$0x1]  ;;  %p303_p0 = por %p302_p13, %p301_p12 }
  0x37   :  { %254 = vrcp.f32 %v58_v38  ;;  %v44_v38 = vld [vmem:[#allocation6 + $0x7] sm:$0x1]  ;;  %p304_p1 = pnand %p303_p0, %p297_p11 }
  0x39   :  { %v251_v39 = vpop.eup %250 }
  0x3a   :  { %v79_v41 = vmul.f32 %v251_v39, %v77_v30  ;;  %v45_v39 = vld [vmem:[#allocation6 + $0x8] sm:$0x1] }
  0x3b   :  { %v253_v42 = vpop.eup %252 }
  0x3c   :  { %v81_v43 = vsel %vm80_vm2, %v77_v30, %v79_v41  ;;  %v112_v46 = vmul.f32 %v253_v42, %v110_v34  ;;  %v181_v41 = vstv %s180_s5  ;;  %v199_v42 = vstv %s198_s6 }
  0x3d   :  { %v84_v45 = vsel %vm82_vm3, %v83_v40, %v81_v43  ;;  %v163_v40 = vstv %s162_s4 }
  0x3e   :  { %v85_v47 = vmax.f32 %v84_v45, 1e-06  ;;  %v114_v48 = vsel %vm113_vm4, %v110_v34, %v112_v46 }
  0x3f   :  { %v117_v49 = vsel %vm115_vm5, %v116_v44, %v114_v48 }
  0x40   :  { %256 = vrcp.f32 %v85_v47  ;;  %v118_v50 = vmax.f32 %v117_v49, 1e-06 }
  0x41   :  { %v255_v51 = vpop.eup %254 }
  0x42   :  { %258 = vrcp.f32 %v118_v50  ;;  %v61_v52 = vmul.f32 %v255_v51, %v368_v0  ;;  %v62_v53 = vmul.f32 %v255_v51, %v370_v1  ;;  %v63_v54 = vmul.f32 %v255_v51, %v372_v2 }
  0x4a   :  { %v257_v55 = vpop.eup %256 }
  0x4b   :  { %v88_v56 = vmul.f32 %v257_v55, %v66_v15  ;;  %v89_v57 = vmul.f32 %v257_v55, %v69_v16  ;;  %v90_v58 = vmul.f32 %v257_v55, %v72_v17 }
  0x4c   :  { %v259_v63 = vpop.eup %258 }
  0x4d   :  { %v91_v59 = vmul.f32 %v88_v56, %v61_v52  ;;  %v92_v60 = vmul.f32 %v89_v57, %v62_v53  ;;  %v94_v61 = vmul.f32 %v90_v58, %v63_v54  ;;  %v121_v5 = vmul.f32 %v259_v63, %v99_v18 }
  0x4e   :  { %v122_v6 = vmul.f32 %v259_v63, %v102_v24  ;;  %v123_v7 = vmul.f32 %v259_v63, %v105_v25  ;;  %v155_v25 = vstv %s154_s22 }
  0x4f   :  { %v93_v62 = vadd.f32 %v92_v60, %v91_v59 }
  0x51   :  { %v95_v3 = vadd.f32 %v94_v61, %v93_v62 }
  0x53   :  { %v124_v4 = vmul.f32 2.0, %v95_v3  ;;  %vm137_vm6 = vcmp.gt.f32.partialorder %v95_v3, 0.0  ;;  %v96_v23 = vmax.f32 %v95_v3, 0.0 }
  0x55   :  { %v125_v8 = vmul.f32 %v124_v4, %v61_v52  ;;  %v127_v0 = vmul.f32 %v124_v4, %v62_v53  ;;  %v129_v9 = vmul.f32 %v124_v4, %v63_v54  ;;  %v156_v28 = vmul.f32 %v155_v25, %v96_v23 }
  0x56   :  { %v174_v29 = vmul.f32 %v173_v26, %v96_v23  ;;  %v192_v30 = vmul.f32 %v191_v27, %v96_v23 }
  0x57   :  { %v126_v1 = vsub.f32 %v125_v8, %v88_v56  ;;  %v128_v10 = vsub.f32 %v127_v0, %v89_v57  ;;  %v130_v2 = vsub.f32 %v129_v9, %v90_v58  ;;  %v158_v34 = vadd.f32 %v157_v31, %v156_v28 }
  0x58   :  { %v176_v35 = vadd.f32 %v175_v32, %v174_v29  ;;  %v194_v36 = vadd.f32 %v193_v33, %v192_v30 }
  0x59   :  { %v131_v11 = vmul.f32 %v126_v1, %v121_v5  ;;  %v132_v12 = vmul.f32 %v128_v10, %v122_v6  ;;  %v134_v13 = vmul.f32 %v130_v2, %v123_v7  ;;  %v159_v44 = vmul.f32 %v158_v34, %v43_v37 }
  0x5a   :  { %v177_v45 = vmul.f32 %v176_v35, %v44_v38  ;;  %v195_v46 = vmul.f32 %v194_v36, %v45_v39 }
  0x5b   :  { %v133_v14 = vadd.f32 %v132_v12, %v131_v11 }
  0x5d   :  { %v135_v15 = vadd.f32 %v134_v13, %v133_v14 }
  0x5f   :  { %v136_v16 = vmax.f32 %v135_v15, 0.0 }
  0x61   :  { %v138_v17 = vsel %vm137_vm6, %v136_v16, 0.0 }
  0x62   :  { %vm139_vm7 = vcmp.gt.f32.partialorder %v138_v17, 0.0 }
  0x63   :  { %v140_v19 = vsel %vm139_vm7, %v138_v17, 1.0 }
  0x64   :  { %260 = vlog2.f32 %v140_v19 }
  0x6e   :  { %v261_v18 = vpop.eup %260 }
  0x6f   :  { %v142_v21 = vmul.f32 0.6931472, %v261_v18 }
  0x71   :  { %v145_v22 = vmul.f32 %v144_v20, %v142_v21 }
  0x73   :  { %v146_v24 = vmul.f32 1.442695, %v145_v22 }
  0x75   :  { %262 = vpow2.f32 %v146_v24 }
  0x7f   :  { %v263_v43 = vpop.eup %262 }
  0x80   :  { %v148_v47 = vsel %vm139_vm7, %v263_v43, 0.0 }
  0x81   :  { %v164_v48 = vmul.f32 %v163_v40, %v148_v47  ;;  %v182_v49 = vmul.f32 %v181_v41, %v148_v47  ;;  %v200_v50 = vmul.f32 %v199_v42, %v148_v47 }
  0x83   :  { %v165_v51 = vadd.f32 %v164_v48, %v159_v44  ;;  %v183_v52 = vadd.f32 %v182_v49, %v177_v45  ;;  %v201_v53 = vadd.f32 %v200_v50, %v195_v46 }
  0x85   :  { %166 = vst [vmem:[#allocation7] sm:$0x1] %v165_v51  ;;  %184 = vst [vmem:[#allocation7 + $0x1] sm:$0x1] %v183_v52 }
  0x86   :  { %202 = vst [vmem:[#allocation7 + $0x2] sm:$0x1] %v201_v53 }
  0x87   :  { %307 = shalt.err (!%p304_p1)
}
  0x88   :  { %s308_s12 = scalar_lea.hbm %s429_s2, 64 }
  0x89   :  { %p309_p2 = scmp.ne.s32.totalorder %s429_s2, %s308_s12  ;;  %p312_p3 = scmp.lt.u32.totalorder %s308_s12, %s429_s2 }
  0x8b   :  { %p314_p4 = pnand %p312_p3, %p309_p2 }
  0x8d   :  { %317 = shalt.err (!%p314_p4)
}
  0x8e   :  { %212 = dma.vmem_to_hbm [thread:$0]  %s210_s8, 64, %s429_s2, [#allocation4]  }
  0x8f   :  { %322 = dma.done.wait [#allocation4], 64  }
  0x90   :  { %323 = vsyncadd [#allocation4], 4294967232 }
  0x91   :  { %216 = vsyncpa [#allocation3], 1 }
  0x92   :  { %217 = vsyncpa [#allocation4], 1 }
  0x93   :  { %218 = vsyncpa [#allocation5], 1 }

</bundles_post_ra>
